<compile_context>
chip_gen: v7x
topology: tpu7x:2x2x1
jax: 0.10.0
libtpu: 0.0.40
codegen_flags: <defaults>
</compile_context>

<pallas_src>
import functools
import math

import jax
import jax.numpy as jnp
from jax.experimental import pallas as pl
from jax.experimental.pallas import tpu as pltpu


def _round_up(x, m):
    return (x + m - 1) // m * m


def _cdiv(a, b):
    return (a + b - 1) // b


# ----------------------------- kernel ---------------------------------------


def fused_policy_kernel(obs_ref, w_ref, b_ref, out_ref, *, d_obs, h2, out_w):
    """One batch tile: obs (TB, d_obs) -> packed output (TB, out_w)."""
    cdt = w_ref.dtype                                        # f32 or bf16 matmul operands
    obs = obs_ref[...]                                       # (TB, d_obs) f32

    # Static, sublane/lane-aligned slices of the resident parameter slab.
    # (d_obs is rounded to 16 so the bf16 sublane tiles stay aligned.)
    w1 = w_ref[0:d_obs, 0:h2]                                # (d_obs, h2)
    w2 = w_ref[d_obs:d_obs + h2, 0:h2]                       # (h2, h2) block-diag
    w3 = w_ref[d_obs + h2:d_obs + 2 * h2, 0:out_w]           # (h2, out_w) block-diag
    b1 = b_ref[0:1, 0:h2]                                    # biases stay f32
    b2 = b_ref[1:2, 0:h2]
    b3 = b_ref[2:3, 0:out_w]                                 # heads bias + lp const

    # MXU matmuls (optionally bf16 operands), f32 accumulation, f32 tanh/adds.
    h = jnp.tanh(jnp.dot(obs.astype(cdt), w1, preferred_element_type=jnp.float32) + b1)
    h = jnp.tanh(jnp.dot(h.astype(cdt), w2, preferred_element_type=jnp.float32) + b2)
    out_ref[...] = jnp.dot(h.astype(cdt), w3, preferred_element_type=jnp.float32) + b3


# ----------------------------- wrapper ---------------------------------------


def _pack_params(params, d_obs, h2, out_w, slab_w):
    """Fuse actor/critic weights into one lane-aligned slab + one bias slab."""
    H = params["w_p1"].shape[1]
    A = params["w_a"].shape[1]
    d = params["w_p1"].shape[0]

    # Layer 1: [W_p1 | W_v1]  ->  (d_obs, slab_w)
    w1 = jnp.zeros((d_obs, slab_w), jnp.float32)
    w1 = w1.at[:d, :H].set(params["w_p1"])
    w1 = w1.at[:d, H:2 * H].set(params["w_v1"])

    # Layer 2: block-diagonal -> (h2, slab_w)
    w2 = jnp.zeros((h2, slab_w), jnp.float32)
    w2 = w2.at[:H, :H].set(params["w_p2"])
    w2 = w2.at[H:2 * H, H:2 * H].set(params["w_v2"])

    # Heads: actions in lanes 0..A-1, value in lane A -> (h2, slab_w).
    # NOTE: column A+1 MUST stay all-zero: the constant log_prob is injected
    # purely through the bias slab lane A+1 below.
    w3 = jnp.zeros((h2, slab_w), jnp.float32)
    w3 = w3.at[:H, :A].set(params["w_a"])
    w3 = w3.at[H:2 * H, A:A + 1].set(params["w_vn"])

    w_slab = jnp.concatenate([w1, w2, w3], axis=0)           # (d_obs + 2*h2, slab_w)

    # Constant log_prob of the deterministic (mean) action, folded into the
    # head bias at lane A+1.
    lp_const = -jnp.sum(params["log_std"] + 0.5 * math.log(2.0 * math.pi))

    b_slab = jnp.zeros((3, slab_w), jnp.float32)
    b_slab = b_slab.at[0, :H].set(params["b_p1"][0])
    b_slab = b_slab.at[0, H:2 * H].set(params["b_v1"][0])
    b_slab = b_slab.at[1, :H].set(params["b_p2"][0])
    b_slab = b_slab.at[1, H:2 * H].set(params["b_v2"][0])
    b_slab = b_slab.at[2, :A].set(params["b_a"][0])
    b_slab = b_slab.at[2, A].set(params["b_vn"][0, 0])
    b_slab = b_slab.at[2, A + 1].set(lp_const)
    del out_w  # (kept for signature symmetry; out_w <= slab_w always holds here)
    return w_slab, b_slab


def sb3_policy_forward(obs, params, *, batch_tile=2048, use_bf16=True):
    """Full SB3 policy forward (actions, values, log_prob) in one Pallas kernel."""
    B, obs_dim = obs.shape
    H = params["w_p1"].shape[1]
    A = params["w_a"].shape[1]

    d_obs = _round_up(obs_dim, 16)                # 16: bf16 sublane-tile aligned
    h2 = _round_up(2 * H, 128)                    # fused hidden width (lane dense)
    out_w = _round_up(A + 2, 8)                   # NARROW packed output width
    slab_w = max(h2, out_w)

    w_slab, b_slab = _pack_params(params, d_obs, h2, out_w, slab_w)
    if use_bf16:
        # bf16 matmul operands, f32 accumulate (preferred_element_type) in-kernel.
        w_slab = w_slab.astype(jnp.bfloat16)

    # Batch tiling: auto-scale tile with B, cap at batch_tile, and give the
    # grid >=2 steps when possible so "parallel" spans both v7x TensorCores.
    b_al = _round_up(max(B, 1), 8)
    n_steps = max(1, _cdiv(b_al, batch_tile))
    if n_steps == 1 and b_al >= 16:
        n_steps = 2
    tb = _round_up(_cdiv(b_al, n_steps), 8)
    Bp = tb * n_steps

    obs = jnp.asarray(obs, jnp.float32)
    if Bp != B or d_obs != obs_dim:
        # Pad only when actually needed (ragged batch / unaligned obs_dim).
        obs_p = jnp.pad(obs, ((0, Bp - B), (0, d_obs - obs_dim)))
    else:
        obs_p = obs

    kernel = functools.partial(fused_policy_kernel, d_obs=d_obs, h2=h2, out_w=out_w)

    out = pl.pallas_call(
        kernel,
        out_shape=jax.ShapeDtypeStruct((Bp, out_w), jnp.float32),
        grid=(n_steps,),
        in_specs=[
            pl.BlockSpec((tb, d_obs), lambda i: (i, 0)),          # obs tile
            pl.BlockSpec(w_slab.shape, lambda i: (0, 0)),         # weights: resident
            pl.BlockSpec(b_slab.shape, lambda i: (0, 0)),         # biases:  resident
        ],
        out_specs=pl.BlockSpec((tb, out_w), lambda i: (i, 0)),    # narrow packed out
        compiler_params=pltpu.CompilerParams(
            dimension_semantics=("parallel",)),                   # megacore on v7x
    )(obs_p, w_slab, b_slab)

    actions = out[:B, :A]
    values = out[:B, A:A + 1]
    log_prob = out[:B, A + 1]                     # SB3 returns shape (B,)
    return actions, values, log_prob


# ----------------------------- test harness ----------------------------------


def make_params(key, obs_dim, hidden, action_dim):
    """Deterministic synthetic parameters (shapes match SB3 MlpPolicy defaults)."""
    ks = jax.random.split(key, 6)

    def lin(k, fan_in, fan_out):
        scale = 1.0 / math.sqrt(fan_in)
        kw, kb = jax.random.split(k)
        w = jax.random.uniform(kw, (fan_in, fan_out), jnp.float32, -scale, scale)
        b = jax.random.uniform(kb, (1, fan_out), jnp.float32, -scale, scale)
        return w, b

    w_p1, b_p1 = lin(ks[0], obs_dim, hidden)
    w_p2, b_p2 = lin(ks[1], hidden, hidden)
    w_a, b_a = lin(ks[2], hidden, action_dim)
    w_v1, b_v1 = lin(ks[3], obs_dim, hidden)
    w_v2, b_v2 = lin(ks[4], hidden, hidden)
    w_vn, b_vn = lin(ks[5], hidden, 1)
    log_std = jnp.zeros((1, action_dim), jnp.float32)  # SB3 default log_std_init=0.0

    return dict(w_p1=w_p1, b_p1=b_p1, w_p2=w_p2, b_p2=b_p2,
                w_a=w_a, b_a=b_a,
                w_v1=w_v1, b_v1=b_v1, w_v2=w_v2, b_v2=b_v2,
                w_vn=w_vn, b_vn=b_vn, log_std=log_std)


def reference_forward(obs, p):
    h = jnp.tanh(obs @ p["w_p1"] + p["b_p1"])
    h = jnp.tanh(h @ p["w_p2"] + p["b_p2"])
    actions = h @ p["w_a"] + p["b_a"]
    g = jnp.tanh(obs @ p["w_v1"] + p["b_v1"])
    g = jnp.tanh(g @ p["w_v2"] + p["b_v2"])
    values = g @ p["w_vn"] + p["b_vn"]
    lp = -jnp.sum(p["log_std"] + 0.5 * math.log(2.0 * math.pi))
    log_prob = jnp.full((obs.shape[0],), lp, jnp.float32)
    return actions, values, log_prob


def _check(actions, values, log_prob, ref_a, ref_v, ref_lp, atol):
    assert actions.shape == ref_a.shape
    assert values.shape == ref_v.shape
    assert log_prob.shape == ref_lp.shape
    assert jnp.allclose(actions, ref_a, atol=atol), "actions mismatch"
    assert jnp.allclose(values, ref_v, atol=atol), "values mismatch"
    assert jnp.allclose(log_prob, ref_lp, atol=1e-5), "log_prob mismatch"


if __name__ == "__main__":
    key = jax.random.PRNGKey(0)

    # --- case 1: tiny batch (single grid step, no padding needed) ------------
    B, OBS_DIM, HIDDEN, ACTION_DIM = 2, 16, 64, 4
    k_obs, k_par, key = jax.random.split(key, 3)
    obs = jax.random.normal(k_obs, (B, OBS_DIM), jnp.float32)
    params = make_params(k_par, OBS_DIM, HIDDEN, ACTION_DIM)
    ref = reference_forward(obs, params)

    # exact f32 path
    out_f32 = sb3_policy_forward(obs, params, use_bf16=False)
    jax.block_until_ready(out_f32)
    _check(*out_f32, *ref, atol=1e-5)

    # default bf16-matmul path (relaxed tolerance vs f32 reference)
    out_bf16 = sb3_policy_forward(obs, params)
    jax.block_until_ready(out_bf16)
    _check(*out_bf16, *ref, atol=2e-2)

    # --- case 2: ragged batch + unaligned obs_dim, multi-step grid -----------
    B2, OBS2, HID2, ACT2 = 37, 10, 32, 3
    k_obs2, k_par2, key = jax.random.split(key, 3)
    obs2 = jax.random.normal(k_obs2, (B2, OBS2), jnp.float32)
    params2 = make_params(k_par2, OBS2, HID2, ACT2)
    ref2 = reference_forward(obs2, params2)

    out2_f32 = sb3_policy_forward(obs2, params2, batch_tile=16, use_bf16=False)
    jax.block_until_ready(out2_f32)
    _check(*out2_f32, *ref2, atol=1e-5)

    out2_bf16 = sb3_policy_forward(obs2, params2, batch_tile=16)
    jax.block_until_ready(out2_bf16)
    _check(*out2_bf16, *ref2, atol=2e-2)

    print("KERNEL_OK")
</pallas_src>

<mosaic_0001>
module attributes {stable_mosaic.version = 11 : i64} {
  func.func @fused_policy_kernel(%arg0: i32, %arg1: memref<8x16xf32, #tpu.memory_space<vmem>>, %arg2: memref<272x128xf32, #tpu.memory_space<vmem>>, %arg3: memref<3x128xf32, #tpu.memory_space<vmem>>, %arg4: memref<8x8xf32, #tpu.memory_space<vmem>>) attributes {dimension_semantics = [#tpu.dimension_semantics<parallel>], iteration_bounds = array<i64: 1>, scalar_prefetch = 0 : i64, scratch_operands = 0 : i64, tpu.core_type = #tpu.core_type<tc>, window_params = [{transform_indices = @transform_0, window_bounds = array<i64: 8, 16>}, {pipeline_mode = #tpu.pipeline_mode<synchronous>, transform_indices = @transform_1, window_bounds = array<i64: 272, 128>}, {pipeline_mode = #tpu.pipeline_mode<synchronous>, transform_indices = @transform_2, window_bounds = array<i64: 3, 128>}, {transform_indices = @transform_3, window_bounds = array<i64: 8, 8>}]} {
    %c0 = arith.constant 0 : index
    %c0_0 = arith.constant 0 : index
    %0 = vector.load %arg1[%c0, %c0_0] : memref<8x16xf32, #tpu.memory_space<vmem>>, vector<8x16xf32>
    %c0_1 = arith.constant 0 : index
    %c0_2 = arith.constant 0 : index
    %1 = vector.load %arg2[%c0_1, %c0_2] : memref<272x128xf32, #tpu.memory_space<vmem>>, vector<16x128xf32>
    %c16 = arith.constant 16 : index
    %c0_3 = arith.constant 0 : index
    %2 = vector.load %arg2[%c16, %c0_3] : memref<272x128xf32, #tpu.memory_space<vmem>>, vector<128x128xf32>
    %c144 = arith.constant 144 : index
    %c0_4 = arith.constant 0 : index
    %3 = vector.load %arg2[%c144, %c0_4] : memref<272x128xf32, #tpu.memory_space<vmem>>, vector<128x8xf32>
    %c0_5 = arith.constant 0 : index
    %c0_6 = arith.constant 0 : index
    %4 = vector.load %arg3[%c0_5, %c0_6] : memref<3x128xf32, #tpu.memory_space<vmem>>, vector<1x128xf32>
    %c1 = arith.constant 1 : index
    %c0_7 = arith.constant 0 : index
    %5 = vector.load %arg3[%c1, %c0_7] : memref<3x128xf32, #tpu.memory_space<vmem>>, vector<1x128xf32>
    %c2 = arith.constant 2 : index
    %c0_8 = arith.constant 0 : index
    %6 = vector.load %arg3[%c2, %c0_8] : memref<3x128xf32, #tpu.memory_space<vmem>>, vector<1x8xf32>
    %cst = arith.constant dense<0.000000e+00> : vector<8x128xf32>
    %7 = tpu.matmul %0, %1, %cst {dimension_numbers = #tpu.dot_dimension_numbers<[1], [0], [0], [1], [0, 0, 1, 1], [], []>} : vector<8x16xf32>, vector<16x128xf32>, vector<8x128xf32> -> vector<8x128xf32>
    %8 = vector.broadcast %4 : vector<1x128xf32> to vector<8x128xf32>
    %9 = arith.addf %7, %8 : vector<8x128xf32>
    %10 = math.tanh %9 : vector<8x128xf32>
    %cst_9 = arith.constant dense<0.000000e+00> : vector<8x128xf32>
    %11 = tpu.matmul %10, %2, %cst_9 {dimension_numbers = #tpu.dot_dimension_numbers<[1], [0], [0], [1], [0, 0, 1, 1], [], []>} : vector<8x128xf32>, vector<128x128xf32>, vector<8x128xf32> -> vector<8x128xf32>
    %12 = vector.broadcast %5 : vector<1x128xf32> to vector<8x128xf32>
    %13 = arith.addf %11, %12 : vector<8x128xf32>
    %14 = math.tanh %13 : vector<8x128xf32>
    %cst_10 = arith.constant dense<0.000000e+00> : vector<8x8xf32>
    %15 = tpu.matmul %14, %3, %cst_10 {dimension_numbers = #tpu.dot_dimension_numbers<[1], [0], [0], [1], [0, 0, 1, 1], [], []>} : vector<8x128xf32>, vector<128x8xf32>, vector<8x8xf32> -> vector<8x8xf32>
    %16 = vector.broadcast %6 : vector<1x8xf32> to vector<8x8xf32>
    %17 = arith.addf %15, %16 : vector<8x8xf32>
    %c0_11 = arith.constant 0 : index
    %c0_12 = arith.constant 0 : index
    %18 = vector.load %arg4[%c0_11, %c0_12] : memref<8x8xf32, #tpu.memory_space<vmem>>, vector<8x8xf32>
    tpu.vector_store %arg4[%c0_11, %c0_12], %17 {strides = array<i32>} : memref<8x8xf32, #tpu.memory_space<vmem>>, vector<8x8xf32>,
    return
  }
  func.func @transform_0(%arg0: i32) -> (i32, i32) {
    %c0_i32 = arith.constant 0 : i32
    %c0_i32_0 = arith.constant 0 : i32
    return %arg0, %c0_i32 : i32, i32
  }
  func.func @transform_1(%arg0: i32) -> (i32, i32) {
    %c0_i32 = arith.constant 0 : i32
    %c0_i32_0 = arith.constant 0 : i32
    %c0_i32_1 = arith.constant 0 : i32
    return %c0_i32, %c0_i32_0 : i32, i32
  }
  func.func @transform_2(%arg0: i32) -> (i32, i32) {
    %c0_i32 = arith.constant 0 : i32
    %c0_i32_0 = arith.constant 0 : i32
    %c0_i32_1 = arith.constant 0 : i32
    return %c0_i32, %c0_i32_0 : i32, i32
  }
  func.func @transform_3(%arg0: i32) -> (i32, i32) {
    %c0_i32 = arith.constant 0 : i32
    %c0_i32_0 = arith.constant 0 : i32
    return %arg0, %c0_i32 : i32, i32
  }
}

</mosaic_0001>

<bundles_post_ra>
// kernel: tpu_custom_call.1
= control target key start
LH: loop header
LB: loop body
LE: loop exit
PB: predicated region body
PF: predicated region fallthrough
CT: control target
= control target key end

     0   :  { %8 = vsyncpa [#allocation3], 0  ;;  %s678_s0 = inlined_call_operand.hbm [shape: f32[8,16], index: 0, kind: input, shape index: {}]   ;;  %s679_s1 = inlined_call_operand.hbm [shape: f32[272,128], index: 1, kind: input, shape index: {}]   ;;  %s680_s2 = inlined_call_operand.vmem [shape: f32[3,128], index: 2, kind: input, shape index: {}]   ;;  %s681_s3 = inlined_call_operand.hbm [shape: f32[8,8], index: 3, kind: output, shape index: {}]  }
   0x1   :  { %9 = vsyncpa [#allocation6], 0 }
   0x2   :  { %10 = vsyncpa [#allocation4], 0  ;;  %s578_s12 = smov [#allocation2]   ;;  %s579_s14 = smov [#allocation5]  }
   0x3   :  { %s17_s13 = sshll.u32 %s578_s12, 4  ;;  %s26_s15 = sshll.u32 %s579_s14, 4  ;;  %s18_s13 = int_to_ptr.vmem [resolvable:$true] %s17_s13  ;;  %s606_s15 = int_to_ptr.vmem [resolvable:$true] %s26_s15 }
   0x4   :  { %s506_s18 = scalar_lea.hbm %s678_s0, 128 }
   0x5   :  { %p507_p0 = scmp.ne.s32.totalorder %s678_s0, %s506_s18  ;;  %p510_p1 = scmp.lt.u32.totalorder %s506_s18, %s678_s0 }
   0x7   :  { %p512_p2 = pnand %p510_p1, %p507_p0 }
   0x9   :  { %515 = shalt.err (!%p512_p2)
}
   0xa   :  { %s516_s23 = scalar_lea.vmem %s18_s13, 128  ;;  %p521_p4 = scmp.lt.s32.totalorder %s18_s13, %s18_s13 }
   0xb   :  { %p517_p3 = scmp.ne.s32.totalorder %s18_s13, %s516_s23  ;;  %p522_p5 = scmp.lt.s32.totalorder %s516_s23, %s516_s23 }
   0xd   :  { %p523_p6 = por %p522_p5, %p521_p4 }
   0xf   :  { %p524_p7 = pnand %p523_p6, %p517_p3 }
  0x11   :  { %527 = shalt.err (!%p524_p7)
}
  0x12   :  { %20 = dma.hbm_to_vmem [thread:$0]  %s678_s0, 128, %s18_s13, [#allocation3]  }
  0x13   :  { %s528_s28 = scalar_lea.hbm %s679_s1, 4352 }
  0x14   :  { %p529_p8 = scmp.ne.s32.totalorder %s679_s1, %s528_s28  ;;  %p532_p9 = scmp.lt.u32.totalorder %s528_s28, %s679_s1 }
  0x16   :  { %p534_p10 = pnand %p532_p9, %p529_p8 }
  0x18   :  { %537 = shalt.err (!%p534_p10)
}
  0x19   :  { %s538_s6 = scalar_lea.vmem %s606_s15, 4352  ;;  %p543_p12 = scmp.lt.s32.totalorder %s606_s15, %s606_s15 }
  0x1a   :  { %p539_p11 = scmp.ne.s32.totalorder %s606_s15, %s538_s6  ;;  %p544_p13 = scmp.lt.s32.totalorder %s538_s6, %s538_s6 }
  0x1c   :  { %p545_p0 = por %p544_p13, %p543_p12 }
  0x1e   :  { %p546_p1 = pnand %p545_p0, %p539_p11 }
  0x20   :  { %549 = shalt.err (!%p546_p1)
}
  0x21   :  { %s580_s0 = smov 128   ;;  %s581_s7 = smov 8  }
  0x22   :  { %32 = dma.hbm_to_vmem [thread:$0]  %s679_s1, 4352, %s606_s15, [#allocation6], %s580_s0, %s580_s0, %s581_s7  }
  0x23   :  { %572 = dma.done.wait [#allocation3], 128  }
  0x24   :  { %573 = vsyncadd [#allocation3], 4294967168 }
  0x25   :  { %574 = dma.done.wait [#allocation6], 4352  }
  0x26   :  { %575 = vsyncadd [#allocation6], 4294962944  ;;  %v582_v0 = vmov 0.0|0.0   ;;  %vm583_vm0 = vmmov 0   ;;  %v584_v1 = vmov 0.0   ;;  %v42_v2 = vld [vmem:[#allocation5] sm:$0xff] }
  0x27   :  { %443 = vmatprep.subr.bf16.mxu0 %v582_v0  ;;  %370 = vmatprep.mubr.msk.f32.mxu0 %vm583_vm0, %v584_v1  ;;  %v43_v3 = vld [vmem:[#allocation5 + $0x8] sm:$0xff]  ;;  %v44_v5 = vld [vmem:[#allocation5 + $0x10] sm:$0xff]  ;;  %v45_v6 = vld [vmem:[#allocation5 + $0x18] sm:$0xff]  ;;  %vm83_vm1 = vcmask 130048   ;;  %s585_s15 = smov [#allocation7]   ;;  %vm307_vm2 = vcmask 64512  }
  0x28   :  { %446 = vmatprep.subr.bf16.mxu1 %v582_v0  ;;  %405 = vmatprep.mubr.msk.f32.mxu1 %vm583_vm0, %v584_v1  ;;  %v444_v4 = vpack.c.bf16 %v43_v3, %v42_v2  ;;  %v46_v7 = vld [vmem:[#allocation5 + $0x20] sm:$0xff]  ;;  %v447_v8 = vpack.c.bf16 %v45_v6, %v44_v5  ;;  %v47_v9 = vld [vmem:[#allocation5 + $0x28] sm:$0xff]  ;;  %v41_v10 = vld [vmem:[#allocation2] sm:$0xff]  ;;  %s315_s16 = sshll.u32 %s585_s15, 4  ;;  %s316_s16 = int_to_ptr.vmem [resolvable:$true] %s315_s16 }
  0x29   :  { %v450_v11 = vpack.c.bf16 %v47_v9, %v46_v7  ;;  %v48_v12 = vld [vmem:[#allocation5 + $0x30] sm:$0xff]  ;;  %v49_v13 = vld [vmem:[#allocation5 + $0x38] sm:$0xff]  ;;  %v50_v15 = vld [vmem:[#allocation5 + $0x40] sm:$0xff]  ;;  %s550_s17 = scalar_lea.vmem %s316_s16, 128  ;;  %p555_p3 = scmp.lt.s32.totalorder %s316_s16, %s316_s16 }
  0x2a   :  { %445 = vmatpush3.bf16.msra.mxu0 %v444_v4  ;;  %448 = vmatpush3.bf16.msra.mxu1 %v447_v8  ;;  %v453_v14 = vpack.c.bf16 %v49_v13, %v48_v12  ;;  %v51_v16 = vld [vmem:[#allocation5 + $0x48] sm:$0xff]  ;;  %v52_v18 = vld [vmem:[#allocation5 + $0x50] sm:$0xff]  ;;  %v53_v19 = vld [vmem:[#allocation5 + $0x58] sm:$0xff]  ;;  %p551_p2 = scmp.ne.s32.totalorder %s316_s16, %s550_s17  ;;  %p556_p4 = scmp.lt.s32.totalorder %s550_s17, %s550_s17 }
  0x2b   :  { %470 = vmatprep.subr.bf16.mxu0 %v582_v0  ;;  %449 = vmatprep.subr.bf16.mxu1 %v582_v0  ;;  %v456_v17 = vpack.c.bf16 %v51_v16, %v50_v15  ;;  %v459_v20 = vpack.c.bf16 %v53_v19, %v52_v18  ;;  %v54_v21 = vld [vmem:[#allocation5 + $0x60] sm:$0xff]  ;;  %v55_v22 = vld [vmem:[#allocation5 + $0x68] sm:$0xff]  ;;  %v56_v24 = vld [vmem:[#allocation5 + $0x70] sm:$0xff] }
  0x2c   :  { %v462_v23 = vpack.c.bf16 %v55_v22, %v54_v21  ;;  %v57_v25 = vld [vmem:[#allocation5 + $0x78] sm:$0xff]  ;;  %v58_v27 = vld [vmem:[#allocation5 + $0x80] sm:$0xff]  ;;  %v59_v28 = vld [vmem:[#allocation5 + $0x88] sm:$0xff]  ;;  %p557_p5 = por %p556_p4, %p555_p3 }
  0x2d   :  { %371 = vmatmul.mubr.msk.f32.vlgmr.msra.gmra.mrb[0].mxu0 %vm83_vm1, %v41_v10  ;;  %v465_v26 = vpack.c.bf16 %v57_v25, %v56_v24  ;;  %v468_v29 = vpack.c.bf16 %v59_v28, %v58_v27  ;;  %v60_v30 = vld [vmem:[#allocation5 + $0x90] sm:$0xff]  ;;  %v61_v31 = vld [vmem:[#allocation5 + $0x98] sm:$0xff]  ;;  %v62_v32 = vld [vmem:[#allocation5 + $0xa0] sm:$0xff] }
  0x2e   :  { %440 = vmatprep.mubr.msk.f32.mxu0 %vm583_vm0, %v584_v1  ;;  %451 = vmatpush3.bf16.msra.mxu1 %v450_v11  ;;  %v471_v33 = vpack.c.bf16 %v61_v31, %v60_v30  ;;  %v63_v34 = vld [vmem:[#allocation5 + $0xa8] sm:$0xff]  ;;  %v64_v36 = vld [vmem:[#allocation5 + $0xb0] sm:$0xff]  ;;  %v65_v37 = vld [vmem:[#allocation5 + $0xb8] sm:$0xff]  ;;  %p558_p6 = pnand %p557_p5, %p551_p2 }
  0x2f   :  { %452 = vmatprep.subr.bf16.mxu1 %v582_v0  ;;  %v474_v35 = vpack.c.bf16 %v63_v34, %v62_v32  ;;  %v477_v38 = vpack.c.bf16 %v65_v37, %v64_v36  ;;  %v66_v39 = vld [vmem:[#allocation5 + $0xc0] sm:$0xff]  ;;  %v67_v40 = vld [vmem:[#allocation5 + $0xc8] sm:$0xff]  ;;  %v68_v42 = vld [vmem:[#allocation5 + $0xd0] sm:$0xff] }
  0x30   :  { %472 = vmatpush3.bf16.msra.mxu0 %v471_v33  ;;  %v480_v41 = vpack.c.bf16 %v67_v40, %v66_v39  ;;  %v69_v43 = vld [vmem:[#allocation5 + $0xd8] sm:$0xff]  ;;  %v70_v50 = vld [vmem:[#allocation5 + $0xe0] sm:$0xff]  ;;  %v71_v51 = vld [vmem:[#allocation5 + $0xe8] sm:$0xff] }
  0x31   :  { %473 = vmatprep.subr.bf16.mxu0 %v582_v0  ;;  %v483_v44 = vpack.c.bf16 %v69_v43, %v68_v42  ;;  %v325_v45 = vld [vmem:[%s680_s2] ss:$0 sm:$0xff]  ;;  %v486_v52 = vpack.c.bf16 %v71_v51, %v70_v50  ;;  %v72_v53 = vld [vmem:[#allocation5 + $0xf0] sm:$0xff]  ;;  %v74_v56 = vld [vmem:[#allocation5 + $0x100] sm:$0xff] }
  0x32   :  { %454 = vmatpush3.bf16.msra.mxu1 %v453_v14  ;;  %v73_v54 = vld [vmem:[#allocation5 + $0xf8] sm:$0xff]  ;;  %v75_v57 = vld [vmem:[#allocation5 + $0x108] sm:$0xff] }
  0x33   :  { %455 = vmatprep.subr.bf16.mxu1 %v582_v0  ;;  %v489_v55 = vpack.c.bf16 %v73_v54, %v72_v53  ;;  %v492_v58 = vpack.c.bf16 %v75_v57, %v74_v56  ;;  %v327_v59 = vld [vmem:[%s680_s2 + $0x1] ss:$0 sm:$0xff]  ;;  %v328_v1 = vld [vmem:[%s680_s2 + $0x2] ss:$0 sm:$0xff] }
  0x34   :  { %475 = vmatpush3.bf16.msra.mxu0 %v474_v35 }
  0x35   :  { %476 = vmatprep.subr.bf16.mxu0 %v582_v0 }
  0x36   :  { %457 = vmatpush3.bf16.msra.mxu1 %v456_v17 }
  0x37   :  { %458 = vmatprep.subr.bf16.mxu1 %v582_v0 }
  0x38   :  { %478 = vmatpush3.bf16.msra.mxu0 %v477_v38 }
  0x39   :  { %479 = vmatprep.subr.bf16.mxu0 %v582_v0 }
  0x3a   :  { %460 = vmatpush3.bf16.msra.mxu1 %v459_v20 }
  0x3b   :  { %461 = vmatprep.subr.bf16.mxu1 %v582_v0 }
  0x3c   :  { %481 = vmatpush3.bf16.msra.mxu0 %v480_v41 }
  0x3d   :  { %482 = vmatprep.subr.bf16.mxu0 %v582_v0 }
  0x3e   :  { %463 = vmatpush3.bf16.msra.mxu1 %v462_v23 }
  0x3f   :  { %464 = vmatprep.subr.bf16.mxu1 %v582_v0 }
  0x40   :  { %484 = vmatpush3.bf16.msra.mxu0 %v483_v44 }
  0x41   :  { %485 = vmatprep.subr.bf16.mxu0 %v582_v0 }
  0x42   :  { %466 = vmatpush3.bf16.msra.mxu1 %v465_v26 }
  0x43   :  { %467 = vmatprep.subr.bf16.mxu1 %v582_v0 }
  0x44   :  { %487 = vmatpush3.bf16.msra.mxu0 %v486_v52 }
  0x45   :  { %488 = vmatprep.subr.bf16.mxu0 %v582_v0 }
  0x46   :  { %469 = vmatpush3.bf16.msra.mxu1 %v468_v29 }
  0x48   :  { %490 = vmatpush3.bf16.msra.mxu0 %v489_v55 }
  0x49   :  { %491 = vmatprep.subr.bf16.mxu0 %v582_v0 }
  0x4c   :  { %493 = vmatpush3.bf16.msra.mxu0 %v492_v58 }
 0x100   :  { %v153_v46 = vpop.f32.mrb[0].mxu0 }
 0x101   :  { %v154_v47 = vadd.f32 %v325_v45, %v153_v46  ;;  %v372_v48 = vpop.f32.mrb[1].mxu0 }
 0x103   :  { %502 = vtanh.f32 %v154_v47 }
 0x10d   :  { %v503_v49 = vpop.eup %502 }
 0x10e   :  { %406 = vmatmul.mubr.f32.vlgmr.msra.gmra.mrb[0].mxu1 %v503_v49 }
 0x1e1   :  { %v228_v60 = vpop.f32.mrb[0].mxu1 }
 0x1e2   :  { %v229_v61 = vadd.f32 %v327_v59, %v228_v60  ;;  %v407_v62 = vpop.f32.mrb[1].mxu1 }
 0x1e4   :  { %504 = vtanh.f32 %v229_v61 }
 0x1ee   :  { %v505_v63 = vpop.eup %504 }
 0x1ef   :  { %441 = vmatmul.mubr.f32.vlgmr.msra.gmra.mrb[2].mxu0 %v505_v63 }
 0x2c2   :  { %v303_v2 = vpop.f32.mrb[2].mxu0 }
 0x2c3   :  { %v304_v0 = vadd.f32 %v328_v1, %v303_v2  ;;  %v442_v3 = vpop.f32.mrb[3].mxu0 }
 0x2c5   :  { %308 = vst.msk [vmem:[#allocation7] sm:$0xff] %vm307_vm2, %v304_v0 }
 0x2c6   :  { %561 = shalt.err (!%p558_p6)
}
 0x2c7   :  { %s562_s20 = scalar_lea.hbm %s681_s3, 128 }
 0x2c8   :  { %p563_p7 = scmp.ne.s32.totalorder %s681_s3, %s562_s20  ;;  %p566_p8 = scmp.lt.u32.totalorder %s562_s20, %s681_s3 }
 0x2ca   :  { %p568_p9 = pnand %p566_p8, %p563_p7 }
 0x2cc   :  { %571 = shalt.err (!%p568_p9)
}
 0x2cd   :  { %318 = dma.vmem_to_hbm [thread:$0]  %s316_s16, 128, %s681_s3, [#allocation4]  }
 0x2ce   :  { %576 = dma.done.wait [#allocation4], 128  }
 0x2cf   :  { %577 = vsyncadd [#allocation4], 4294967168 }
 0x2d0   :  { %322 = vsyncpa [#allocation3], 1 }
 0x2d1   :  { %323 = vsyncpa [#allocation6], 1 }
 0x2d2   :  { %324 = vsyncpa [#allocation4], 1 }

</bundles_post_ra>
